<compile_context>
chip_gen: v5e
topology: v5e:2x2
jax: 0.10.0
libtpu: 0.0.40
codegen_flags: <defaults>
</compile_context>

<pallas_src>
import functools

import jax
import jax.numpy as jnp
from jax.experimental import pallas as pl
from jax.experimental.pallas import tpu as pltpu


_NEG_BIG = -1e30   # finite "-inf" for padded vocab columns (keeps exp() at 0)
_MiB = 1 << 20


def _round_up(x, m):
    return (x + m - 1) // m * m


def _physical_vmem_bytes():
    """Per-core VMEM capacity; conservative 64 MiB fallback (v7x-safe)."""
    try:
        return int(pltpu.get_tpu_info().vmem_capacity_bytes)
    except Exception:
        return 64 * _MiB


def _estimate_vmem_bytes(one_pass, tm, tv, v_pad, d, xb, wb, ob):
    """Conservative VMEM footprint estimate (double-buffered blocks)."""
    x_tile = 2 * tm * d * xb          # input rows (resident, budget 2x anyway)
    w_tile = 2 * d * tv * wb          # streamed weight tile
    b_tile = 2 * tv * 4               # bias tile
    stats = 2 * tm * 4                # running max / sum-exp scratch
    logits_tmp = 2 * tm * tv * 4      # f32 matmul result + elementwise temps
    if one_pass:
        out = 2 * tm * v_pad * ob     # full-vocab resident output block
        store = tm * v_pad * 4        # f32 logits slab scratch
    else:
        out = 2 * tm * tv * ob        # per-vocab-tile output block
        store = 0
    return x_tile + w_tile + b_tile + stats + logits_tmp + out + store


def _choose_plan(M, D, V, tm, tv, xb, wb, ob, path, budget):
    """Pick (tm_eff, tv_eff, one_pass) that fits the VMEM budget."""
    # Row tile: minimize padding when M is not a multiple of tm.
    n_row_tiles = max(1, -(-M // tm))
    tm_eff = min(_round_up(-(-M // n_row_tiles), 8), _round_up(M, 8))
    tv_eff = min(_round_up(tv, 128), _round_up(V, 128))
    while True:
        v_pad = _round_up(V, tv_eff)
        if path in ("auto", "one_pass") and _estimate_vmem_bytes(
                True, tm_eff, tv_eff, v_pad, D, xb, wb, ob) <= budget:
            return tm_eff, tv_eff, True
        if path != "one_pass" and _estimate_vmem_bytes(
                False, tm_eff, tv_eff, v_pad, D, xb, wb, ob) <= budget:
            return tm_eff, tv_eff, False
        # Shrink tiles and retry (keep (8, 128) legality).
        if tv_eff > 512:
            tv_eff = max(512, _round_up(tv_eff // 2, 128))
        elif tm_eff > 64:
            tm_eff = max(64, _round_up(tm_eff // 2, 8))
        else:
            return tm_eff, tv_eff, (path == "one_pass")   # best effort


def _generator_one_pass_kernel(x_ref, w_ref, b_ref, o_ref, m_ref, l_ref, s_ref):
    """Single matmul sweep over vocab tiles; emit log-probs at the last tile.

    Grid: (row_tiles, vocab_tiles)  -- reduction (vocab) axis last.

    x_ref : (tm, D)       input rows (resident across vocab axis)
    w_ref : (D,  tv)      projection weight tile (streamed)
    b_ref : (1,  tv)      projection bias tile
    o_ref : (tm, V_pad)   full-vocab output block (resident; written at last j)
    m_ref : (tm, 1) f32   running max
    l_ref : (tm, 1) f32   running sum of exp
    s_ref : (nj, tm, tv)  f32 logits slab (one entry per vocab tile)
    """
    j = pl.program_id(1)
    nj = s_ref.shape[0]
    tv = s_ref.shape[2]

    logits = jnp.dot(x_ref[...], w_ref[...], preferred_element_type=jnp.float32)
    logits = logits + b_ref[...].astype(jnp.float32)

    @pl.when(j == 0)
    def _init():
        m_ref[...] = jnp.full_like(m_ref, -jnp.inf)
        l_ref[...] = jnp.zeros_like(l_ref)

    # Online softmax statistics.
    m_prev = m_ref[...]
    m_new = jnp.maximum(m_prev, jnp.max(logits, axis=-1, keepdims=True))
    l_ref[...] = (l_ref[...] * jnp.exp(m_prev - m_new)
                  + jnp.sum(jnp.exp(logits - m_new), axis=-1, keepdims=True))
    m_ref[...] = m_new

    # Park this vocab tile's logits (no recompute pass needed).
    s_ref[j] = logits

    @pl.when(j == nj - 1)
    def _emit():
        lse = m_ref[...] + jnp.log(l_ref[...])
        for jj in range(nj):   # static unroll over vocab tiles
            o_ref[:, jj * tv:(jj + 1) * tv] = (s_ref[jj] - lse).astype(o_ref.dtype)


def _generator_two_pass_kernel(x_ref, w_ref, b_ref, o_ref, m_ref, l_ref):
    """Fused linear + bias + online log_softmax (two sweeps over vocab tiles).

    Grid: (row_tiles, 2 passes, vocab_tiles)  -- reduction (vocab) axis last.

    Pass 0 accumulates running (max, sum-exp); pass 1 recomputes the logits
    tile and emits log-probs = logits - lse.
    """
    p = pl.program_id(1)
    j = pl.program_id(2)
    nj = pl.num_programs(2)

    logits = jnp.dot(x_ref[...], w_ref[...], preferred_element_type=jnp.float32)
    logits = logits + b_ref[...].astype(jnp.float32)

    @pl.when(jnp.logical_and(p == 0, j == 0))
    def _init():
        m_ref[...] = jnp.full_like(m_ref, -jnp.inf)
        l_ref[...] = jnp.zeros_like(l_ref)

    @pl.when(p == 0)
    def _online_stats():
        m_prev = m_ref[...]
        m_new = jnp.maximum(m_prev, jnp.max(logits, axis=-1, keepdims=True))
        l_ref[...] = (l_ref[...] * jnp.exp(m_prev - m_new)
                      + jnp.sum(jnp.exp(logits - m_new), axis=-1, keepdims=True))
        m_ref[...] = m_new

    @pl.when(jnp.logical_and(p == 0, j == nj - 1))
    def _finalize_stats():
        # Fold running (max, sum-exp) into lse; m_ref now holds log-sum-exp.
        m_ref[...] = m_ref[...] + jnp.log(l_ref[...])

    @pl.when(p == 1)
    def _emit():
        o_ref[...] = (logits - m_ref[...]).astype(o_ref.dtype)


@functools.partial(
    jax.jit,
    static_argnames=("tm", "tv", "out_dtype", "compute_dtype", "path"))
def generator_forward(x, weight, bias, *, tm=512, tv=4096, out_dtype=None,
                      compute_dtype=None, path="auto"):
    """log_softmax(x @ weight + bias, axis=-1).

    x:      (B, S, D)   activations
    weight: (D, V)      projection weight (transposed vs torch's (V, D))
    bias:   (V,)        projection bias
    compute_dtype: optional matmul-operand dtype (e.g. jnp.bfloat16); f32 MXU
                   accumulation is kept regardless.
    path: "auto" | "one_pass" | "two_pass"
    returns (B, S, V) log-probabilities (out_dtype, default x.dtype).
    """
    B, S, D = x.shape
    V = weight.shape[1]
    M = B * S
    if out_dtype is None:
        out_dtype = x.dtype

    x2d = x.reshape(M, D)
    w = weight
    if compute_dtype is not None:
        x2d = x2d.astype(compute_dtype)
        w = w.astype(compute_dtype)
    xb = jnp.dtype(x2d.dtype).itemsize
    wb = jnp.dtype(w.dtype).itemsize
    ob = jnp.dtype(out_dtype).itemsize

    phys = _physical_vmem_bytes()
    budget = int(phys * 0.85)
    tm_eff, tv_eff, one_pass = _choose_plan(M, D, V, tm, tv, xb, wb, ob,
                                            path, budget)

    M_pad = _round_up(M, tm_eff)
    V_pad = _round_up(V, tv_eff)

    if M_pad != M:
        x2d = jnp.pad(x2d, ((0, M_pad - M), (0, 0)))

    b2d = bias.reshape(1, V).astype(jnp.float32)
    if V_pad != V:
        # Padded vocab columns: zero weight + very negative bias -> they add
        # exp(~-1e30) = 0 to the softmax denominator and are sliced off below.
        w = jnp.pad(w, ((0, 0), (0, V_pad - V)))
        b2d = jnp.pad(b2d, ((0, 0), (0, V_pad - V)), constant_values=_NEG_BIG)

    est = _estimate_vmem_bytes(one_pass, tm_eff, tv_eff, V_pad, D, xb, wb, ob)
    vmem_limit = int(min(phys - 2 * _MiB, max(32 * _MiB, int(1.25 * est))))

    # TODO(synk): if the consumer is NLL/cross-entropy, fuse the label gather
    # here instead of materializing the full (M, V) log-prob matrix.
    # TODO(synk): on v7x, confirm in the trace that the row axis shards across
    # both TensorCores; otherwise switch to pltpu.CORE_PARALLEL / pl.core_map.

    if one_pass:
        nj = V_pad // tv_eff
        out2d = pl.pallas_call(
            _generator_one_pass_kernel,
            out_shape=jax.ShapeDtypeStruct((M_pad, V_pad), out_dtype),
            grid_spec=pltpu.PrefetchScalarGridSpec(
                num_scalar_prefetch=0,
                grid=(M_pad // tm_eff, nj),
                in_specs=[
                    # x rows: block index invariant along vocab axis -> DMA'd
                    # once per row tile and stays resident.
                    pl.BlockSpec((tm_eff, D), lambda i, j: (i, 0)),
                    # Weight / bias vocab tiles (streamed, double-buffered).
                    pl.BlockSpec((D, tv_eff), lambda i, j: (0, j)),
                    pl.BlockSpec((1, tv_eff), lambda i, j: (0, j)),
                ],
                # Full-vocab output block, resident across the vocab sweep and
                # written once at the last vocab tile -> M*V bytes of HBM write.
                out_specs=pl.BlockSpec((tm_eff, V_pad), lambda i, j: (i, 0)),
                scratch_shapes=[
                    pltpu.VMEM((tm_eff, 1), jnp.float32),          # running max
                    pltpu.VMEM((tm_eff, 1), jnp.float32),          # running sum-exp
                    pltpu.VMEM((nj, tm_eff, tv_eff), jnp.float32),  # logits slab
                ],
            ),
            compiler_params=pltpu.CompilerParams(
                dimension_semantics=("parallel", "arbitrary"),
                vmem_limit_bytes=vmem_limit,
            ),
        )(x2d, w, b2d)
    else:
        grid = (M_pad // tm_eff, 2, V_pad // tv_eff)
        out2d = pl.pallas_call(
            _generator_two_pass_kernel,
            out_shape=jax.ShapeDtypeStruct((M_pad, V_pad), out_dtype),
            grid_spec=pltpu.PrefetchScalarGridSpec(
                num_scalar_prefetch=0,
                grid=grid,
                in_specs=[
                    # x rows: resident across pass/vocab axes.
                    pl.BlockSpec((tm_eff, D), lambda i, p, j: (i, 0)),
                    pl.BlockSpec((D, tv_eff), lambda i, p, j: (0, j)),
                    pl.BlockSpec((1, tv_eff), lambda i, p, j: (0, j)),
                ],
                # During pass 0 the output is parked on vocab block 0 (never
                # written there; it is filled at pass 1 / j == 0 before its
                # first flush). Each vocab tile is written exactly once.
                out_specs=pl.BlockSpec((tm_eff, tv_eff),
                                       lambda i, p, j: (i, p * j)),
                scratch_shapes=[
                    pltpu.VMEM((tm_eff, 1), jnp.float32),  # running max / lse
                    pltpu.VMEM((tm_eff, 1), jnp.float32),  # running sum-exp
                ],
            ),
            compiler_params=pltpu.CompilerParams(
                dimension_semantics=("parallel", "arbitrary", "arbitrary"),
                vmem_limit_bytes=vmem_limit,
            ),
        )(x2d, w, b2d)

    return out2d[:M, :V].reshape(B, S, V)


if __name__ == "__main__":
    key = jax.random.PRNGKey(0)

    def make_problem(key, B, S, D, V):
        kx, kw, kb = jax.random.split(key, 3)
        x = jax.random.normal(kx, (B, S, D), dtype=jnp.float32)
        bound = 1.0 / (D ** 0.5)   # nn.Linear-style uniform init
        weight = jax.random.uniform(kw, (D, V), minval=-bound, maxval=bound,
                                    dtype=jnp.float32)
        bias = jax.random.uniform(kb, (V,), minval=-bound, maxval=bound,
                                  dtype=jnp.float32)
        return x, weight, bias

    k1, k2 = jax.random.split(key)

    # Problem 1: nice sizes (d_model=32, vocab=128, batch=2, seq=8).
    x, weight, bias = make_problem(k1, 2, 8, 32, 128)
    ref = jax.nn.log_softmax(jnp.einsum("bsd,dv->bsv", x, weight) + bias,
                             axis=-1)
    for path in ("one_pass", "two_pass", "auto"):
        out = jax.block_until_ready(generator_forward(x, weight, bias, path=path))
        assert out.shape == ref.shape
        assert jnp.allclose(out, ref, atol=2e-5, rtol=2e-5), f"mismatch ({path})"

    # Problem 2: awkward sizes exercising row + vocab padding (M=7, V=100).
    x2, weight2, bias2 = make_problem(k2, 1, 7, 24, 100)
    ref2 = jax.nn.log_softmax(jnp.einsum("bsd,dv->bsv", x2, weight2) + bias2,
                              axis=-1)
    for path in ("one_pass", "two_pass"):
        out2 = jax.block_until_ready(
            generator_forward(x2, weight2, bias2, path=path))
        assert out2.shape == ref2.shape
        assert jnp.allclose(out2, ref2, atol=2e-5, rtol=2e-5), f"mismatch2 ({path})"

    print("KERNEL_OK")
</pallas_src>

<mosaic_0001>
module attributes {stable_mosaic.version = 11 : i64} {
  func.func @_generator_one_pass_kernel(%arg0: i32, %arg1: i32, %arg2: memref<16x32xf32, #tpu.memory_space<vmem>>, %arg3: memref<32x128xf32, #tpu.memory_space<vmem>>, %arg4: memref<1x128xf32, #tpu.memory_space<vmem>>, %arg5: memref<16x128xf32, #tpu.memory_space<vmem>>, %arg6: memref<16x1xf32, #tpu.memory_space<vmem>>, %arg7: memref<16x1xf32, #tpu.memory_space<vmem>>, %arg8: memref<1x16x128xf32, #tpu.memory_space<vmem>>) attributes {dimension_semantics = [#tpu.dimension_semantics<parallel>, #tpu.dimension_semantics<arbitrary>], iteration_bounds = array<i64: 1, 1>, scalar_prefetch = 0 : i64, scratch_operands = 3 : i64, tpu.core_type = #tpu.core_type<tc>, window_params = [{transform_indices = @transform_0, window_bounds = array<i64: 16, 32>}, {transform_indices = @transform_1, window_bounds = array<i64: 32, 128>}, {transform_indices = @transform_2, window_bounds = array<i64: 1, 128>}, {transform_indices = @transform_3, window_bounds = array<i64: 16, 128>}]} {
    %c0 = arith.constant 0 : index
    %c0_0 = arith.constant 0 : index
    %0 = vector.load %arg2[%c0, %c0_0] : memref<16x32xf32, #tpu.memory_space<vmem>>, vector<16x32xf32>
    %c0_1 = arith.constant 0 : index
    %c0_2 = arith.constant 0 : index
    %1 = vector.load %arg3[%c0_1, %c0_2] : memref<32x128xf32, #tpu.memory_space<vmem>>, vector<32x128xf32>
    %cst = arith.constant dense<0.000000e+00> : vector<16x128xf32>
    %2 = tpu.matmul %0, %1, %cst {dimension_numbers = #tpu.dot_dimension_numbers<[1], [0], [0], [1], [0, 0, 1, 1], [], []>} : vector<16x32xf32>, vector<32x128xf32>, vector<16x128xf32> -> vector<16x128xf32>
    %c0_3 = arith.constant 0 : index
    %c0_4 = arith.constant 0 : index
    %3 = vector.load %arg4[%c0_3, %c0_4] : memref<1x128xf32, #tpu.memory_space<vmem>>, vector<1x128xf32>
    %4 = vector.broadcast %3 : vector<1x128xf32> to vector<16x128xf32>
    %5 = arith.addf %2, %4 : vector<16x128xf32>
    %c0_i32 = arith.constant 0 : i32
    %6 = arith.cmpi eq, %arg1, %c0_i32 : i32
    %7 = arith.extui %6 : i1 to i32
    %c0_i32_5 = arith.constant 0 : i32
    %8 = arith.cmpi ne, %7, %c0_i32_5 : i32
    scf.if %8 {
      %cst_20 = arith.constant 0xFF800000 : f32
      %32 = vector.broadcast %cst_20 : f32 to vector<16x1xf32>
      %c0_21 = arith.constant 0 : index
      %c0_22 = arith.constant 0 : index
      %33 = vector.load %arg6[%c0_21, %c0_22] : memref<16x1xf32, #tpu.memory_space<vmem>>, vector<16x1xf32>
      tpu.vector_store %arg6[%c0_21, %c0_22], %32 {strides = array<i32>} : memref<16x1xf32, #tpu.memory_space<vmem>>, vector<16x1xf32>,
      %cst_23 = arith.constant 0.000000e+00 : f32
      %34 = vector.broadcast %cst_23 : f32 to vector<16x1xf32>
      %c0_24 = arith.constant 0 : index
      %c0_25 = arith.constant 0 : index
      %35 = vector.load %arg7[%c0_24, %c0_25] : memref<16x1xf32, #tpu.memory_space<vmem>>, vector<16x1xf32>
      tpu.vector_store %arg7[%c0_24, %c0_25], %34 {strides = array<i32>} : memref<16x1xf32, #tpu.memory_space<vmem>>, vector<16x1xf32>,
    } else {
    }
    %c0_6 = arith.constant 0 : index
    %c0_7 = arith.constant 0 : index
    %9 = vector.load %arg6[%c0_6, %c0_7] : memref<16x1xf32, #tpu.memory_space<vmem>>, vector<16x1xf32>
    %cst_8 = arith.constant dense<0xFF800000> : vector<16xf32>
    %10 = vector.multi_reduction <maximumf>, %5, %cst_8 [1] : vector<16x128xf32> to vector<16xf32>
    %11 = vector.shape_cast %10 : vector<16xf32> to vector<16x1xf32>
    %12 = arith.maximumf %9, %11 : vector<16x1xf32>
    %c0_9 = arith.constant 0 : index
    %c0_10 = arith.constant 0 : index
    %13 = vector.load %arg7[%c0_9, %c0_10] : memref<16x1xf32, #tpu.memory_space<vmem>>, vector<16x1xf32>
    %14 = arith.subf %9, %12 : vector<16x1xf32>
    %15 = math.exp %14 : vector<16x1xf32>
    %16 = arith.mulf %13, %15 : vector<16x1xf32>
    %17 = vector.broadcast %12 : vector<16x1xf32> to vector<16x128xf32>
    %18 = arith.subf %5, %17 : vector<16x128xf32>
    %19 = math.exp %18 : vector<16x128xf32>
    %cst_11 = arith.constant dense<0.000000e+00> : vector<16xf32>
    %20 = vector.multi_reduction <add>, %19, %cst_11 [1] : vector<16x128xf32> to vector<16xf32>
    %21 = vector.shape_cast %20 : vector<16xf32> to vector<16x1xf32>
    %22 = arith.addf %16, %21 : vector<16x1xf32>
    %c0_12 = arith.constant 0 : index
    %c0_13 = arith.constant 0 : index
    %23 = vector.load %arg7[%c0_12, %c0_13] : memref<16x1xf32, #tpu.memory_space<vmem>>, vector<16x1xf32>
    tpu.vector_store %arg7[%c0_12, %c0_13], %22 {strides = array<i32>} : memref<16x1xf32, #tpu.memory_space<vmem>>, vector<16x1xf32>,
    %c0_14 = arith.constant 0 : index
    %c0_15 = arith.constant 0 : index
    %24 = vector.load %arg6[%c0_14, %c0_15] : memref<16x1xf32, #tpu.memory_space<vmem>>, vector<16x1xf32>
    tpu.vector_store %arg6[%c0_14, %c0_15], %12 {strides = array<i32>} : memref<16x1xf32, #tpu.memory_space<vmem>>, vector<16x1xf32>,
    %25 = arith.index_cast %arg1 : i32 to index
    %c0_16 = arith.constant 0 : index
    %c0_17 = arith.constant 0 : index
    %26 = vector.load %arg8[%25, %c0_16, %c0_17] : memref<1x16x128xf32, #tpu.memory_space<vmem>>, vector<1x16x128xf32>
    %27 = vector.shape_cast %26 : vector<1x16x128xf32> to vector<16x128xf32>
    %28 = vector.shape_cast %5 : vector<16x128xf32> to vector<1x16x128xf32>
    tpu.vector_store %arg8[%25, %c0_16, %c0_17], %28 {strides = array<i32>} : memref<1x16x128xf32, #tpu.memory_space<vmem>>, vector<1x16x128xf32>,
    %c0_i32_18 = arith.constant 0 : i32
    %29 = arith.cmpi eq, %arg1, %c0_i32_18 : i32
    %30 = arith.extui %29 : i1 to i32
    %c0_i32_19 = arith.constant 0 : i32
    %31 = arith.cmpi ne, %30, %c0_i32_19 : i32
    scf.if %31 {
      %c0_20 = arith.constant 0 : index
      %c0_21 = arith.constant 0 : index
      %32 = vector.load %arg6[%c0_20, %c0_21] : memref<16x1xf32, #tpu.memory_space<vmem>>, vector<16x1xf32>
      %c0_22 = arith.constant 0 : index
      %c0_23 = arith.constant 0 : index
      %33 = vector.load %arg7[%c0_22, %c0_23] : memref<16x1xf32, #tpu.memory_space<vmem>>, vector<16x1xf32>
      %34 = math.log %33 : vector<16x1xf32>
      %35 = arith.addf %32, %34 : vector<16x1xf32>
      %c0_24 = arith.constant 0 : index
      %c0_25 = arith.constant 0 : index
      %c0_26 = arith.constant 0 : index
      %36 = vector.load %arg8[%c0_24, %c0_25, %c0_26] : memref<1x16x128xf32, #tpu.memory_space<vmem>>, vector<1x16x128xf32>
      %37 = vector.shape_cast %36 : vector<1x16x128xf32> to vector<16x128xf32>
      %38 = vector.broadcast %35 : vector<16x1xf32> to vector<16x128xf32>
      %39 = arith.subf %37, %38 : vector<16x128xf32>
      %c0_27 = arith.constant 0 : index
      %c0_28 = arith.constant 0 : index
      %40 = vector.load %arg5[%c0_27, %c0_28] : memref<16x128xf32, #tpu.memory_space<vmem>>, vector<16x128xf32>
      tpu.vector_store %arg5[%c0_27, %c0_28], %39 {strides = array<i32>} : memref<16x128xf32, #tpu.memory_space<vmem>>, vector<16x128xf32>,
    } else {
    }
    return
  }
  func.func @transform_0(%arg0: i32, %arg1: i32) -> (i32, i32) {
    %c0_i32 = arith.constant 0 : i32
    %c0_i32_0 = arith.constant 0 : i32
    return %arg0, %c0_i32 : i32, i32
  }
  func.func @transform_1(%arg0: i32, %arg1: i32) -> (i32, i32) {
    %c0_i32 = arith.constant 0 : i32
    %c0_i32_0 = arith.constant 0 : i32
    return %c0_i32, %arg1 : i32, i32
  }
  func.func @transform_2(%arg0: i32, %arg1: i32) -> (i32, i32) {
    %c0_i32 = arith.constant 0 : i32
    %c0_i32_0 = arith.constant 0 : i32
    return %c0_i32, %arg1 : i32, i32
  }
  func.func @transform_3(%arg0: i32, %arg1: i32) -> (i32, i32) {
    %c0_i32 = arith.constant 0 : i32
    %c0_i32_0 = arith.constant 0 : i32
    return %arg0, %c0_i32 : i32, i32
  }
}

</mosaic_0001>

<bundles_post_ra>
// kernel: generator_forward.1
= control target key start
LH: loop header
LB: loop body
LE: loop exit
PB: predicated region body
PF: predicated region fallthrough
CT: control target
= control target key end

     0   :  { %8 = vsyncpa [#allocation6], 0  ;;  %s368_s0 = inlined_call_operand.hbm [shape: f32[16,32], index: 0, kind: input, shape index: {}]   ;;  %s369_s1 = inlined_call_operand.hbm [shape: f32[32,128], index: 1, kind: input, shape index: {}]   ;;  %s370_s2 = inlined_call_operand.vmem [shape: f32[1,128], index: 2, kind: input, shape index: {}]   ;;  %s371_s3 = inlined_call_operand.hbm [shape: f32[16,128], index: 3, kind: output, shape index: {}]  }
   0x1   :  { %9 = vsyncpa [#allocation9], 0 }
   0x2   :  { %10 = vsyncpa [#allocation7], 0  ;;  %s15_s14 = sshll.u32 %s368_s0, 4  ;;  %s301_s15 = smov [#allocation5]   ;;  %s16_s14 = int_to_ptr.hbm [resolvable:$true] %s15_s14 }
   0x3   :  { %s17_s16 = sshll.u32 %s301_s15, 4  ;;  %s28_s19 = sshll.u32 %s369_s1, 4  ;;  %s18_s16 = int_to_ptr.vmem [resolvable:$true] %s17_s16  ;;  %s29_s19 = int_to_ptr.hbm [resolvable:$true] %s28_s19 }
   0x4   :  { %s302_s20 = smov 128   ;;  %s303_s21 = smov 8  }
   0x5   :  { %23 = dma.hbm_to_vmem [thread:$0]  %s16_s14, 256, %s18_s16, [#allocation6], %s302_s20, %s302_s20, %s303_s21  }
   0x6   :  { %s304_s22 = smov [#allocation8]  }
   0x7   :  { %s30_s23 = sshll.u32 %s304_s22, 4  ;;  %s31_s23 = int_to_ptr.vmem [resolvable:$true] %s30_s23 }
   0x8   :  { %36 = dma.hbm_to_vmem [thread:$0]  %s29_s19, 512, %s31_s23, [#allocation9], %s302_s20, %s302_s20, %s303_s21  }
   0x9   :  { %295 = dma.done.wait [#allocation6], 256  }
   0xa   :  { %296 = vsyncadd [#allocation6], 4294967040 }
   0xb   :  { %297 = dma.done.wait [#allocation9], 512  }
   0xc   :  { %298 = vsyncadd [#allocation9], 4294966784  ;;  %v52_v0 = vld [vmem:[#allocation8 + $0x18] sm:$0xff]  ;;  %v51_v1 = vld [vmem:[#allocation8 + $0x10] sm:$0xff]  ;;  %vm57_vm0 = vcmask 261120   ;;  %vm91_vm1 = vcmask 7168  }
   0xd   :  { %76 = vmatpush.msra.mxu0 %v52_v0  ;;  %196 = vmatpush.msra.mxu1 %v52_v0  ;;  %v50_v2 = vld [vmem:[#allocation8 + $0x8] sm:$0xff]  ;;  %v49_v3 = vld [vmem:[#allocation8] sm:$0xff]  ;;  %v47_v4 = vld [vmem:[#allocation5] sm:$0xff]  ;;  %v305_v6 = vmov -inf   ;;  %v306_v12 = vmov 0   ;;  %v307_v13 = vmov 0.0  }
   0xe   :  { %v48_v5 = vld [vmem:[#allocation5 + $0x8] sm:$0xff]  ;;  %92 = vst.msk [vmem:[#allocation2] sm:$0xff] %vm91_vm1, %v305_v6  ;;  %v210_v7 = vld [vmem:[%s370_s2] ss:$0 sm:$0xff]  ;;  %208 = vset.pattern.permute.xlu1 %v306_v12  ;;  %209 = vset.pattern.permute.xlu0 %v306_v12  ;;  %s308_s2 = smov [#allocation10]   ;;  %s180_s27 = sshll.u32 %s371_s3, 4  ;;  %s181_s27 = int_to_ptr.hbm [resolvable:$true] %s180_s27 }
   0xf   :  { %77 = vmatpush.msra.mxu0 %v51_v1  ;;  %197 = vmatpush.msra.mxu1 %v51_v1  ;;  %93 = vst.msk [vmem:[#allocation2 + $0x8] sm:$0xff] %vm91_vm1, %v305_v6  ;;  %s178_s24 = sshll.u32 %s308_s2, 4  ;;  %s179_s24 = int_to_ptr.vmem [resolvable:$true] %s178_s24 }
  0x10   :  { %94 = vst.msk [vmem:[#allocation3] sm:$0xff] %vm91_vm1, %v307_v13 }
  0x11   :  { %78 = vmatpush.msra.mxu0 %v50_v2  ;;  %198 = vmatpush.msra.mxu1 %v50_v2  ;;  %95 = vst.msk [vmem:[#allocation3 + $0x8] sm:$0xff] %vm91_vm1, %v307_v13 }
  0x13   :  { %79 = vmatpush.msra.mxu0 %v49_v3  ;;  %199 = vmatpush.msra.mxu1 %v49_v3 }
  0x14   :  { %194 = vmatmul.msk.f32.vlgmr.msra.gmra.mxu0 %vm57_vm0, %v47_v4  ;;  %195 = vmatmul.msk.f32.vlgmr.msra.gmra.mxu1 %vm57_vm0, %v48_v5 }
  0x15   :  { %v96_v14 = vld [vmem:[#allocation2] sm:$0xff] }
  0x16   :  { %v97_v18 = vld [vmem:[#allocation2 + $0x8] sm:$0xff] }
  0x17   :  { %v104_v33 = vld [vmem:[#allocation3] sm:$0xff] }
  0x18   :  { %v105_v38 = vld [vmem:[#allocation3 + $0x8] sm:$0xff] }
  0x91   :  { %v81_v8 = vpop.f32.mrf.mxu0  ;;  %v84_v10 = vpop.f32.mrf.mxu1 }
  0x92   :  { %v346_v9 = vadd.f32 %v210_v7, %v81_v8  ;;  %v349_v11 = vadd.f32 %v210_v7, %v84_v10 }
  0x94   :  { %98 = vmax.xlane.f32.xlu0 %v346_v9 }
  0x9c   :  { %100 = vmax.xlane.f32.xlu0 %v349_v11 }
 0x107   :  { %v99_v15 = vpop.xlane.xlu0 %98 }
 0x108   :  { %v102_v16 = vmax.f32 %v96_v14, %v99_v15 }
 0x10a   :  { %v106_v17 = vsub.f32 %v96_v14, %v102_v16  ;;  %139 = vst.msk [vmem:[#allocation2] sm:$0xff] %vm91_vm1, %v102_v16  ;;  %116 = vperm.xlu1 %208, %v102_v16  }
 0x10c   :  { %v108_v30 = vmul.f32 1.442695, %v106_v17 }
 0x10f   :  { %v101_v19 = vpop.xlane.xlu0 %100 }
 0x110   :  { %v103_v20 = vmax.f32 %v97_v18, %v101_v19 }
 0x111   :  { %v148_v46 = vld [vmem:[#allocation2] sm:$0xff] }
 0x112   :  { %v107_v21 = vsub.f32 %v97_v18, %v103_v20  ;;  %140 = vst.msk [vmem:[#allocation2 + $0x8] sm:$0xff] %vm91_vm1, %v103_v20  ;;  %121 = vperm.xlu1 %208, %v103_v20  }
 0x114   :  { %v110_v31 = vmul.f32 1.442695, %v107_v21 }
 0x119   :  { %v149_v50 = vld [vmem:[#allocation2 + $0x8] sm:$0xff] }
 0x17c   :  { %v117_v22 = vpop.permute.xlu1 %116 }
 0x17d   :  { %v124_v23 = vsub.f32 %v346_v9, %v117_v22 }
 0x17f   :  { %v126_v24 = vmul.f32 1.442695, %v124_v23 }
 0x181   :  { %211 = vpow2.f32 %v126_v24 }
 0x184   :  { %v122_v25 = vpop.permute.xlu1 %121 }
 0x185   :  { %v125_v26 = vsub.f32 %v349_v11, %v122_v25 }
 0x187   :  { %v212_v27 = vpop.eup %211  ;;  %v128_v28 = vmul.f32 1.442695, %v125_v26 }
 0x188   :  { %130 = vadd.xlane.f32.xlu2 %v212_v27 }
 0x189   :  { %213 = vpow2.f32 %v128_v28 }
 0x18a   :  { %215 = vpow2.f32 %v108_v30 }
 0x18b   :  { %217 = vpow2.f32 %v110_v31 }
 0x18f   :  { %v214_v29 = vpop.eup %213 }
 0x190   :  { %132 = vadd.xlane.f32.xlu2 %v214_v29  ;;  %v216_v32 = vpop.eup %215 }
 0x191   :  { %v112_v34 = vmul.f32 %v216_v32, %v104_v33  ;;  %v218_v37 = vpop.eup %217 }
 0x192   :  { %v113_v39 = vmul.f32 %v218_v37, %v105_v38 }
 0x1fb   :  { %v131_v35 = vpop.xlane.xlu2 %130 }
 0x1fc   :  { %v134_v36 = vadd.f32 %v131_v35, %v112_v34 }
 0x1fe   :  { %137 = vst.msk [vmem:[#allocation3] sm:$0xff] %vm91_vm1, %v134_v36 }
 0x203   :  { %v133_v40 = vpop.xlane.xlu2 %132 }
 0x204   :  { %v135_v41 = vadd.f32 %v133_v40, %v113_v39 }
 0x205   :  { %v150_v42 = vld [vmem:[#allocation3] sm:$0xff] }
 0x206   :  { %138 = vst.msk [vmem:[#allocation3 + $0x8] sm:$0xff] %vm91_vm1, %v135_v41  ;;  %219 = vlog2.f32 %v150_v42 }
 0x20c   :  { %v220_v43 = vpop.eup %219 }
 0x20d   :  { %v153_v44 = vmul.f32 0.6931472, %v220_v43  ;;  %v151_v45 = vld [vmem:[#allocation3 + $0x8] sm:$0xff] }
 0x20e   :  { %221 = vlog2.f32 %v151_v45 }
 0x20f   :  { %v156_v47 = vadd.f32 %v153_v44, %v148_v46 }
 0x211   :  { %162 = vperm.xlu0 %209, %v156_v47  }
 0x214   :  { %v222_v48 = vpop.eup %221 }
 0x215   :  { %v155_v49 = vmul.f32 0.6931472, %v222_v48 }
 0x217   :  { %v157_v51 = vadd.f32 %v155_v49, %v149_v50 }
 0x219   :  { %167 = vperm.xlu1 %208, %v157_v51  }
 0x283   :  { %v163_v52 = vpop.permute.xlu0 %162 }
 0x284   :  { %v170_v53 = vsub.f32 %v346_v9, %v163_v52 }
 0x286   :  { %172 = vst [vmem:[#allocation10] sm:$0xff] %v170_v53 }
 0x28b   :  { %v168_v54 = vpop.permute.xlu1 %167 }
 0x28c   :  { %v171_v55 = vsub.f32 %v349_v11, %v168_v54 }
 0x28e   :  { %173 = vst [vmem:[#allocation10 + $0x8] sm:$0xff] %v171_v55 }
 0x28f   :  { %186 = dma.vmem_to_hbm [thread:$0]  %s179_s24, 256, %s181_s27, [#allocation7], %s302_s20, %s302_s20, %s303_s21  }
 0x290   :  { %299 = dma.done.wait [#allocation7], 256  }
 0x291   :  { %300 = vsyncadd [#allocation7], 4294967040 }
 0x292   :  { %191 = vsyncpa [#allocation6], 1 }
 0x293   :  { %192 = vsyncpa [#allocation9], 1 }
 0x294   :  { %193 = vsyncpa [#allocation7], 1 }

</bundles_post_ra>
